<compile_context>
chip_gen: v7x
topology: tpu7x:2x2x1
jax: 0.10.0
libtpu: 0.0.40
codegen_flags: <defaults>
</compile_context>

<pallas_src>
import jax
import jax.numpy as jnp
from jax import lax
from jax.experimental import pallas as pl
from jax.experimental.pallas import tpu as pltpu

LANE = 128  # TPU vreg lane width


# ---------------------------------------------------------------------------
# Pallas kernel: fused 3-layer MLP forward (tanh, tanh, identity).
# ---------------------------------------------------------------------------
def critic_kernel(x_ref, w1_ref, b1_ref, w2_ref, b2_ref, w3c_ref, b3_ref,
                  out_ref):
    # x_ref  : (tb, state)     obs tile in native batch-major layout
    # w1_ref : (hidden, state) PyTorch Linear layout (out, in)
    # w2_ref : (hidden, hidden)
    # b1/b2  : (hidden, 1) f32 broadcast across lanes
    # w3c    : (hidden, 1) f32 final-layer weight column
    # b3     : (1, 1)      f32
    # out    : (1, tb)     lane-dense value row

    # In-VMEM cast only (no HBM pass); no-op on the matched-dtype paths.
    x = x_ref[...].astype(w1_ref.dtype)

    # Layer 1: contract over state on x's LAST dim -> (hidden, tb); batch goes
    # to lanes, f32 MXU accumulation.
    h = lax.dot_general(w1_ref[...], x, (((1,), (1,)), ((), ())),
                        preferred_element_type=jnp.float32)
    # tanh at the dtype the next matmul consumes (bf16 EUP on v6e/v7x when the
    # weights are bf16; exact f32 on the f32 path).
    h = jnp.tanh((h + b1_ref[...]).astype(w2_ref.dtype))

    # Layer 2: (hidden, hidden) @ (hidden, tb) -> (hidden, tb), f32 accumulate.
    h = jnp.dot(w2_ref[...], h, preferred_element_type=jnp.float32)
    h = jnp.tanh(h + b2_ref[...])                       # f32 epilogue input

    # Layer 3 (out_features = 1): VPU broadcast-multiply + sublane reduce
    # instead of an M=1 MXU matmul; rides otherwise-idle VPU/XLU slots.
    v = jnp.sum(h * w3c_ref[...], axis=0, keepdims=True) + b3_ref[...]
    out_ref[...] = v.astype(out_ref.dtype)


# ---------------------------------------------------------------------------
# Wrapper
# ---------------------------------------------------------------------------
def critic_forward(obs, params, *, batch_tile=2048, small_batch_threshold=256,
                   force_pallas=False):
    """obs: (batch, state_size) -> (batch,) value estimates (float32)."""
    w1, b1, w2, b2, w3, b3 = params
    assert obs.ndim == 2
    batch, state_size = obs.shape
    hidden = w1.shape[0]
    assert w1.shape == (hidden, state_size)

    # Tiny batches: a single partially-filled 128-lane tile means launch /
    # pipeline overhead dominates; a plain fused XLA dot chain matches or wins.
    if batch <= small_batch_threshold and not force_pallas:
        return critic_reference(obs, params)

    # Biases / final-layer column are added after the f32 accumulation; keep
    # them f32 (tiny, one-shot reshapes — no pass over obs).
    b1c = jnp.reshape(b1, (hidden, 1)).astype(jnp.float32)
    b2c = jnp.reshape(b2, (hidden, 1)).astype(jnp.float32)
    w3c = jnp.reshape(w3, (hidden, 1)).astype(jnp.float32)
    b3c = jnp.reshape(b3, (1, 1)).astype(jnp.float32)

    # --- tile selection -----------------------------------------------------
    lane_batch = pl.cdiv(batch, LANE) * LANE            # batch rounded to lanes
    tb = max(LANE, (batch_tile // LANE) * LANE)
    tb = min(tb, lane_batch)
    # Guarantee >= 2 "parallel" grid steps when the batch allows it, so both
    # v7x TensorCores get work (harmless on single-TC v5e/v6e).
    if lane_batch >= 2 * LANE:
        tb = min(tb, max(LANE, pl.cdiv(lane_batch // 2, LANE) * LANE))

    grid = (pl.cdiv(batch, tb),)
    out_width = grid[0] * tb          # lane-dense output slab; extra cols cut

    in_specs = [
        pl.BlockSpec((tb, state_size),     lambda i: (i, 0)),  # obs (native)
        pl.BlockSpec((hidden, state_size), lambda i: (0, 0)),  # w1 (resident)
        pl.BlockSpec((hidden, 1),          lambda i: (0, 0)),  # b1
        pl.BlockSpec((hidden, hidden),     lambda i: (0, 0)),  # w2
        pl.BlockSpec((hidden, 1),          lambda i: (0, 0)),  # b2
        pl.BlockSpec((hidden, 1),          lambda i: (0, 0)),  # w3 column
        pl.BlockSpec((1, 1),               lambda i: (0, 0)),  # b3
    ]
    out_spec = pl.BlockSpec((1, tb), lambda i: (0, i))

    param_bytes = sum(int(a.size) * a.dtype.itemsize
                      for a in (w1, b1, w2, b2, w3, b3))
    cost = pl.CostEstimate(
        flops=2 * batch * (state_size * hidden + hidden * hidden + hidden),
        transcendentals=2 * batch * hidden,
        bytes_accessed=int(obs.size) * obs.dtype.itemsize + out_width * 4
                       + param_bytes,
    )

    v = pl.pallas_call(
        critic_kernel,
        out_shape=jax.ShapeDtypeStruct((1, out_width), jnp.float32),
        grid_spec=pltpu.PrefetchScalarGridSpec(
            num_scalar_prefetch=0,
            grid=grid,
            in_specs=in_specs,
            out_specs=out_spec,
        ),
        compiler_params=pltpu.CompilerParams(
            dimension_semantics=("parallel",)),
        cost_estimate=cost,
    )(obs, w1, b1c, w2, b2c, w3c, b3c)

    # (1, out_width) -> (batch,)  == torch.squeeze(v_net(obs), -1)
    return v[0, :batch]


def cast_matmul_weights(params, dtype):
    """Cast only the big matmul weights (w1, w2); biases/w3 stay f32."""
    w1, b1, w2, b2, w3, b3 = params
    return (w1.astype(dtype), b1, w2.astype(dtype), b2, w3, b3)


# ---------------------------------------------------------------------------
# Deterministic parameter init (PyTorch Linear default: U(-1/sqrt(fan_in), ..))
# Weights stored in PyTorch layout (out_features, in_features); biases (out,).
# ---------------------------------------------------------------------------
def init_critic_params(key, state_size, hidden_nodes):
    def linear(k, fan_in, fan_out):
        kw, kb = jax.random.split(k)
        bound = 1.0 / jnp.sqrt(jnp.float32(fan_in))
        w = jax.random.uniform(kw, (fan_out, fan_in), jnp.float32,
                               minval=-bound, maxval=bound)
        b = jax.random.uniform(kb, (fan_out,), jnp.float32,
                               minval=-bound, maxval=bound)
        return w, b

    k1, k2, k3 = jax.random.split(key, 3)
    w1, b1 = linear(k1, state_size, hidden_nodes)     # Linear(state, hidden)
    w2, b2 = linear(k2, hidden_nodes, hidden_nodes)   # Linear(hidden, hidden)
    w3, b3 = linear(k3, hidden_nodes, 1)              # Linear(hidden, 1)
    return (w1, b1, w2, b2, w3, b3)


# Pure-JAX reference (also used as the small-batch XLA fallback path).
def critic_reference(obs, params):
    w1, b1, w2, b2, w3, b3 = params
    x = obs.astype(jnp.float32)
    h = jnp.tanh(jnp.dot(x, w1.T.astype(jnp.float32), precision="highest")
                 + b1.astype(jnp.float32))
    h = jnp.tanh(jnp.dot(h, w2.T.astype(jnp.float32), precision="highest")
                 + b2.astype(jnp.float32))
    v = jnp.dot(h, w3.T.astype(jnp.float32), precision="highest") \
        + b3.astype(jnp.float32)
    return jnp.squeeze(v, axis=-1)


if __name__ == "__main__":
    # Small shapes consistent with the module (hidden_nodes=32, Tanh, o_dim=1).
    state_size = 32
    hidden_nodes = 32

    key = jax.random.PRNGKey(0)
    k_obs, k_obs2, k_params = jax.random.split(key, 3)
    params = init_critic_params(k_params, state_size, hidden_nodes)

    # --- Pallas f32 path, batch a multiple of the lane tile -----------------
    batch = 512
    obs = jax.random.normal(k_obs, (batch, state_size), dtype=jnp.float32)
    v = jax.block_until_ready(critic_forward(obs, params))
    v_ref = critic_reference(obs, params)
    assert v.shape == (batch,), f"expected ({batch},), got {v.shape}"
    assert jnp.allclose(v, v_ref, atol=1e-4, rtol=1e-4), "f32 mismatch"

    # --- Pallas f32 path, batch NOT a multiple of 128 (partial last block) --
    batch2 = 300
    obs2 = jax.random.normal(k_obs2, (batch2, state_size), dtype=jnp.float32)
    v2 = jax.block_until_ready(critic_forward(obs2, params))
    v2_ref = critic_reference(obs2, params)
    assert v2.shape == (batch2,)
    assert jnp.allclose(v2, v2_ref, atol=1e-4, rtol=1e-4), "partial-block mismatch"

    # --- bf16 data path: obs already bf16 upstream, bf16 w1/w2, f32 accum ---
    obs_bf16 = obs.astype(jnp.bfloat16)               # upstream storage dtype
    params_bf16 = cast_matmul_weights(params, jnp.bfloat16)
    v_bf16 = jax.block_until_ready(critic_forward(obs_bf16, params_bf16))
    assert v_bf16.shape == (batch,)
    assert jnp.allclose(v_bf16, v_ref, atol=5e-2, rtol=5e-2), "bf16 mismatch"

    # --- tiny batch -> plain XLA fallback path (no Pallas launch overhead) --
    obs_small = obs[:8]
    v_small = jax.block_until_ready(critic_forward(obs_small, params))
    assert v_small.shape == (8,)
    assert jnp.allclose(v_small, v_ref[:8], atol=1e-4, rtol=1e-4), "small-batch mismatch"

    print("KERNEL_OK")
</pallas_src>

<mosaic_0001>
module attributes {stable_mosaic.version = 11 : i64} {
  func.func @critic_kernel(%arg0: i32, %arg1: memref<256x32xf32, #tpu.memory_space<vmem>>, %arg2: memref<32x32xf32, #tpu.memory_space<vmem>>, %arg3: memref<32x1xf32, #tpu.memory_space<vmem>>, %arg4: memref<32x32xf32, #tpu.memory_space<vmem>>, %arg5: memref<32x1xf32, #tpu.memory_space<vmem>>, %arg6: memref<32x1xf32, #tpu.memory_space<vmem>>, %arg7: memref<1x1xf32, #tpu.memory_space<vmem>>, %arg8: memref<1x256xf32, #tpu.memory_space<vmem>>) attributes {dimension_semantics = [#tpu.dimension_semantics<parallel>], iteration_bounds = array<i64: 2>, scalar_prefetch = 0 : i64, scratch_operands = 0 : i64, tpu.core_type = #tpu.core_type<tc>, window_params = [{transform_indices = @transform_0, window_bounds = array<i64: 256, 32>}, {pipeline_mode = #tpu.pipeline_mode<synchronous>, transform_indices = @transform_1, window_bounds = array<i64: 32, 32>}, {pipeline_mode = #tpu.pipeline_mode<synchronous>, transform_indices = @transform_2, window_bounds = array<i64: 32, 1>}, {pipeline_mode = #tpu.pipeline_mode<synchronous>, transform_indices = @transform_3, window_bounds = array<i64: 32, 32>}, {pipeline_mode = #tpu.pipeline_mode<synchronous>, transform_indices = @transform_4, window_bounds = array<i64: 32, 1>}, {pipeline_mode = #tpu.pipeline_mode<synchronous>, transform_indices = @transform_5, window_bounds = array<i64: 32, 1>}, {pipeline_mode = #tpu.pipeline_mode<synchronous>, transform_indices = @transform_6, window_bounds = array<i64: 1, 1>}, {transform_indices = @transform_7, window_bounds = array<i64: 1, 256>}]} {
    %c0 = arith.constant 0 : index
    %c0_0 = arith.constant 0 : index
    %0 = vector.load %arg1[%c0, %c0_0] : memref<256x32xf32, #tpu.memory_space<vmem>>, vector<256x32xf32>
    %c0_1 = arith.constant 0 : index
    %c0_2 = arith.constant 0 : index
    %1 = vector.load %arg2[%c0_1, %c0_2] : memref<32x32xf32, #tpu.memory_space<vmem>>, vector<32x32xf32>
    %cst = arith.constant dense<0.000000e+00> : vector<32x256xf32>
    %2 = tpu.matmul %1, %0, %cst {dimension_numbers = #tpu.dot_dimension_numbers<[1], [1], [0], [0], [0, 0, 1, 0], [], []>} : vector<32x32xf32>, vector<256x32xf32>, vector<32x256xf32> -> vector<32x256xf32>
    %c0_3 = arith.constant 0 : index
    %c0_4 = arith.constant 0 : index
    %3 = vector.load %arg3[%c0_3, %c0_4] : memref<32x1xf32, #tpu.memory_space<vmem>>, vector<32x1xf32>
    %4 = vector.broadcast %3 : vector<32x1xf32> to vector<32x256xf32>
    %5 = arith.addf %2, %4 : vector<32x256xf32>
    %6 = math.tanh %5 : vector<32x256xf32>
    %c0_5 = arith.constant 0 : index
    %c0_6 = arith.constant 0 : index
    %7 = vector.load %arg4[%c0_5, %c0_6] : memref<32x32xf32, #tpu.memory_space<vmem>>, vector<32x32xf32>
    %cst_7 = arith.constant dense<0.000000e+00> : vector<32x256xf32>
    %8 = tpu.matmul %7, %6, %cst_7 {dimension_numbers = #tpu.dot_dimension_numbers<[1], [0], [0], [1], [0, 0, 1, 1], [], []>} : vector<32x32xf32>, vector<32x256xf32>, vector<32x256xf32> -> vector<32x256xf32>
    %c0_8 = arith.constant 0 : index
    %c0_9 = arith.constant 0 : index
    %9 = vector.load %arg5[%c0_8, %c0_9] : memref<32x1xf32, #tpu.memory_space<vmem>>, vector<32x1xf32>
    %10 = vector.broadcast %9 : vector<32x1xf32> to vector<32x256xf32>
    %11 = arith.addf %8, %10 : vector<32x256xf32>
    %12 = math.tanh %11 : vector<32x256xf32>
    %c0_10 = arith.constant 0 : index
    %c0_11 = arith.constant 0 : index
    %13 = vector.load %arg6[%c0_10, %c0_11] : memref<32x1xf32, #tpu.memory_space<vmem>>, vector<32x1xf32>
    %14 = vector.broadcast %13 : vector<32x1xf32> to vector<32x256xf32>
    %15 = arith.mulf %12, %14 : vector<32x256xf32>
    %cst_12 = arith.constant dense<0.000000e+00> : vector<256xf32>
    %16 = vector.multi_reduction <add>, %15, %cst_12 [0] : vector<32x256xf32> to vector<256xf32>
    %17 = vector.shape_cast %16 : vector<256xf32> to vector<1x256xf32>
    %c0_13 = arith.constant 0 : index
    %c0_14 = arith.constant 0 : index
    %18 = vector.load %arg7[%c0_13, %c0_14] : memref<1x1xf32, #tpu.memory_space<vmem>>, vector<1x1xf32>
    %19 = vector.broadcast %18 : vector<1x1xf32> to vector<1x256xf32>
    %20 = arith.addf %17, %19 : vector<1x256xf32>
    %c0_15 = arith.constant 0 : index
    %c0_16 = arith.constant 0 : index
    %21 = vector.load %arg8[%c0_15, %c0_16] : memref<1x256xf32, #tpu.memory_space<vmem>>, vector<1x256xf32>
    tpu.vector_store %arg8[%c0_15, %c0_16], %20 {strides = array<i32>} : memref<1x256xf32, #tpu.memory_space<vmem>>, vector<1x256xf32>,
    return
  }
  func.func @transform_0(%arg0: i32) -> (i32, i32) {
    %c0_i32 = arith.constant 0 : i32
    %c0_i32_0 = arith.constant 0 : i32
    return %arg0, %c0_i32 : i32, i32
  }
  func.func @transform_1(%arg0: i32) -> (i32, i32) {
    %c0_i32 = arith.constant 0 : i32
    %c0_i32_0 = arith.constant 0 : i32
    %c0_i32_1 = arith.constant 0 : i32
    return %c0_i32, %c0_i32_0 : i32, i32
  }
  func.func @transform_2(%arg0: i32) -> (i32, i32) {
    %c0_i32 = arith.constant 0 : i32
    %c0_i32_0 = arith.constant 0 : i32
    %c0_i32_1 = arith.constant 0 : i32
    return %c0_i32, %c0_i32_0 : i32, i32
  }
  func.func @transform_3(%arg0: i32) -> (i32, i32) {
    %c0_i32 = arith.constant 0 : i32
    %c0_i32_0 = arith.constant 0 : i32
    %c0_i32_1 = arith.constant 0 : i32
    return %c0_i32, %c0_i32_0 : i32, i32
  }
  func.func @transform_4(%arg0: i32) -> (i32, i32) {
    %c0_i32 = arith.constant 0 : i32
    %c0_i32_0 = arith.constant 0 : i32
    %c0_i32_1 = arith.constant 0 : i32
    return %c0_i32, %c0_i32_0 : i32, i32
  }
  func.func @transform_5(%arg0: i32) -> (i32, i32) {
    %c0_i32 = arith.constant 0 : i32
    %c0_i32_0 = arith.constant 0 : i32
    %c0_i32_1 = arith.constant 0 : i32
    return %c0_i32, %c0_i32_0 : i32, i32
  }
  func.func @transform_6(%arg0: i32) -> (i32, i32) {
    %c0_i32 = arith.constant 0 : i32
    %c0_i32_0 = arith.constant 0 : i32
    %c0_i32_1 = arith.constant 0 : i32
    return %c0_i32, %c0_i32_0 : i32, i32
  }
  func.func @transform_7(%arg0: i32) -> (i32, i32) {
    %c0_i32 = arith.constant 0 : i32
    %c0_i32_0 = arith.constant 0 : i32
    return %c0_i32, %arg0 : i32, i32
  }
}

</mosaic_0001>

<bundles_post_ra>
// kernel: tpu_custom_call.1
= control target key start
LH: loop header
LB: loop body
LE: loop exit
PB: predicated region body
PF: predicated region fallthrough
CT: control target
= control target key end

     0   :  { %s1427_s0 = inlined_call_operand.vmem [shape: f32[512,32], index: 0, kind: input, shape index: {}]   ;;  %s1428_s1 = inlined_call_operand.vmem [shape: f32[32,32], index: 1, kind: input, shape index: {}]   ;;  %s1429_s2 = inlined_call_operand.vmem [shape: f32[32,1], index: 2, kind: input, shape index: {}]   ;;  %s1430_s3 = inlined_call_operand.vmem [shape: f32[32,32], index: 3, kind: input, shape index: {}]   ;;  %s1431_s4 = inlined_call_operand.vmem [shape: f32[32,1], index: 4, kind: input, shape index: {}]   ;;  %s1432_s5 = inlined_call_operand.vmem [shape: f32[32,1], index: 5, kind: input, shape index: {}]   ;;  %s1433_s6 = inlined_call_operand.<no memory space> [shape: f32[1,1], index: 6, kind: input, shape index: {}]   ;;  %s1434_s7 = inlined_call_operand.hbm [shape: f32[1,512], index: 7, kind: output, shape index: {}]  }
   0x1   :  { %v12_v0 = vstv %s1433_s6 }
   0x2   :  { %13 = vst [vmem:[#allocation2] sm:$0x1] %v12_v0 }
   0x3   :  { %14 = vsyncpa [#allocation4], 0 }
   0x4   :  { %16 = vsyncpa [#allocation4 + $0x1], 0  ;;  %s1180_s26 = smov 0   ;;  %s1182_s27 = smov 0  }
   0x5   :  { %s1184_s28 = smov 0   ;;  %s1186_s29 = smov 0  }
   0x6 LB: > { %s843_s6 = sadd.s32 4294967295, %s1131_s29   ;;  %s844_s30 = sadd.s32 4294967294, %s1131_s29   ;;  %s1131_s29 = sphi %s1186_s29, %s1442_s29   ;;  %s1127_s28 = sphi %s1184_s28, %s1441_s28   ;;  %s1123_s27 = sphi %s1182_s27, %s1440_s27   ;;  %s1119_s26 = sphi %s1180_s26, %s1439_s26  }
   0x7   : > { %s1203_s8 = sadd.s32 1, %s1131_s29   ;;  %s181_s9 = sadd.s32 1, %s1127_s28 }
   0x8   : > { %s178_s10 = ssub.s32 %s1131_s29, %s1203_s8  ;;  %p191_p0 = scmp.ne.s32.totalorder %s1127_s28, %s1123_s27 }
   0x9   : > { %p179_p1 = scmp.eq.s32.totalorder %s178_s10, 0  ;;  %p192_p2 = scmp.eq.s32.totalorder %s843_s6, 1 }
   0xa   : > { %p197_p3 = scmp.ne.s32.totalorder %s1123_s27, %s1119_s26  ;;  %p198_p4 = scmp.eq.s32.totalorder %s844_s30, 1 }
   0xb   : > { %s1213_s11 = scalar_select %p179_p1, %s1127_s28, %s181_s9  }
   0xc   : > { %p1215_p5 = por %p192_p2, %p191_p0  ;;  %p1219_p6 = por %p198_p4, %p197_p3 }
   0xd   : > { %p847_p7 = scmp.ge.s32.totalorder %s1131_s29, 1  ;;  %p243_p8 = scmp.lt.s32.totalorder %s1131_s29, 3 }
   0xf   : > { %p244_p9 = pnand %p847_p7, %p243_p8 }
  0x10   : > { %s1225_s14 = sshll.u32 (!%p244_p9), %s843_s6, 5  ;;  %vm342_vm0 = vcmask (!%p244_p9), 261120   ;;  %v1230_v1 = vld [vmem:[%s1428_s1] sm:$0xff] (!%p244_p9)  ;;  %v1133_v2 = vmov (!%p244_p9), 0   ;;  %v320_v4 = vld [vmem:[%s1429_s2 + $0x10] sm:$0xff] (!%p244_p9)  ;;  %v319_v5 = vld [vmem:[%s1429_s2 + $0x8] sm:$0xff] (!%p244_p9) }
  0x11   : > { %247 = sbr.rel (%p244_p9) target bundleno = 615 (0x267), region = 48  ;;  %p276_p10 = scmp.lt.s32.totalorder (!%p244_p9), %s1225_s14, 63  ;;  %929 = vmatprep.mubr.msk.f32.mxu0 (!%p244_p9), %vm342_vm0, %v1230_v1  ;;  %1035 = vset.pattern.permute.xlu0 (!%p244_p9), %v1133_v2  ;;  %v318_v3 = vld [vmem:[%s1429_s2] sm:$0xff] (!%p244_p9)  ;;  %v321_v6 = vld [vmem:[%s1429_s2 + $0x18] sm:$0xff] (!%p244_p9)  ;;  %vm1255_vm1 = vmpackc.low (!%p244_p9), %vm342_vm0, %vm342_vm0 }
  0x12   : > { %324 = vperm.xlu0 (!%p244_p9), %1035, %v318_v3   ;;  %1036 = vset.pattern.permute.xlu1 (!%p244_p9), %v1133_v2  ;;  %v552_v8 = vld [vmem:[%s1431_s4] sm:$0xff] (!%p244_p9)  ;;  %v553_v9 = vld [vmem:[%s1431_s4 + $0x8] sm:$0xff] (!%p244_p9)  ;;  %v554_v19 = vld [vmem:[%s1431_s4 + $0x10] sm:$0xff] (!%p244_p9)  ;;  %s272_s16 = sand.u32 (!%p244_p9), 1, %s1123_s27   ;;  %s1136_s24 = smov (!%p244_p9), [#allocation3]  }
  0x13   : > { %334 = vperm.xlu1 (!%p244_p9), %1036, %v320_v4   ;;  %v555_v22 = vld [vmem:[%s1431_s4 + $0x18] sm:$0xff] (!%p244_p9)  ;;  %v685_v26 = vld [vmem:[%s1432_s5] sm:$0xff] (!%p244_p9)  ;;  %v686_v28 = vld [vmem:[%s1432_s5 + $0x8] sm:$0xff] (!%p244_p9)  ;;  %s848_s17 = sshll.u32 (!%p244_p9), %s272_s16, 1  ;;  %s771_s22 = scalar_lea.sflag (!%p244_p9), [#allocation4], %s272_s16 }
  0x14   : > { %v687_v29 = vld [vmem:[%s1432_s5 + $0x10] sm:$0xff] (!%p244_p9)  ;;  %v688_v32 = vld [vmem:[%s1432_s5 + $0x18] sm:$0xff] (!%p244_p9)  ;;  %v735_v36 = vld [vmem:[#allocation2] sm:$0x1] (!%p244_p9)  ;;  %s274_s18 = scalar_lea.vmem (!%p244_p9), [#allocation3], %s848_s17  ;;  %s1073_s25 = sshll.u32 (!%p244_p9), %s1136_s24, 4  ;;  %s1074_s25 = int_to_ptr.vmem [resolvable:$false] %s1073_s25 }
  0x15   : > { %v315_v2 = vld [vmem:[%s1428_s1 + $0x8] sm:$0xff] (!%p244_p9)  ;;  %v316_v3 = vld [vmem:[%s1428_s1 + $0x10] sm:$0xff] (!%p244_p9)  ;;  %v317_v4 = vld [vmem:[%s1428_s1 + $0x18] sm:$0xff] (!%p244_p9)  ;;  %s785_s19 = sshll.u32 (!%p244_p9), %s274_s18, 4  ;;  %s1387_s19 = int_to_ptr.vmem [resolvable:$true] %s785_s19 }
  0x16   : > { %329 = vperm.xlu0 (!%p244_p9), %1035, %v319_v5   ;;  %s1069_s23 = scalar_lea.vmem (!%p244_p9), %s1387_s19, 32  ;;  %p1076_p0 = scmp.lt.s32.totalorder (!%p244_p9), %s1387_s19, %s1074_s25 }
  0x17   : > { %339 = vperm.xlu1 (!%p244_p9), %1036, %v321_v6   ;;  %p1070_p11 = scmp.ne.s32.totalorder (!%p244_p9), %s1387_s19, %s1069_s23 }
  0x18   : > { %s277_s21 = scalar_select %p276_p10, %s1225_s14, 63 }
  0x19   : > { %p1071_p12 = pnand %p1070_p11, %p1215_p5 }
  0x1a   : > { %s850_s6 = sshll.u32 %s277_s21, 3  ;;  %558 = vperm.xlu0 %1035, %v552_v8   ;;  %s1385_s21 = scalar_lea.hbm %s1434_s7, %s1225_s14 }
  0x1b   : > { %s1251_s10 = scalar_lea.vmem %s1427_s0, %s850_s6  ;;  %563 = vperm.xlu1 %1036, %v553_v9   ;;  %p1072_p13 = pneg %p1071_p12 }
  0x1c   : > { %v298_v10 = vld [vmem:[%s1251_s10 + $0x80] sm:$0xff]  ;;  %v299_v11 = vld [vmem:[%s1251_s10 + $0x88] sm:$0xff]  ;;  %v300_v15 = vld [vmem:[%s1251_s10 + $0x90] sm:$0xff]  ;;  %s1075_s6 = scalar_lea.vmem %s1074_s25, 64 }
  0x1d   : > { %v282_v12 = vld [vmem:[%s1251_s10] sm:$0xff]  ;;  %v937_v13 = vpack.c.bf16 %v299_v11, %v298_v10  ;;  %v283_v14 = vld [vmem:[%s1251_s10 + $0x8] sm:$0xff]  ;;  %v301_v16 = vld [vmem:[%s1251_s10 + $0x98] sm:$0xff]  ;;  %p1077_p1 = scmp.lt.s32.totalorder %s1075_s6, %s1069_s23 }
  0x1e   : > { %v940_v17 = vpack.c.bf16 %v283_v14, %v282_v12  ;;  %v943_v18 = vpack.c.bf16 %v301_v16, %v300_v15  ;;  %v284_v20 = vld [vmem:[%s1251_s10 + $0x10] sm:$0xff]  ;;  %v285_v21 = vld [vmem:[%s1251_s10 + $0x18] sm:$0xff]  ;;  %v302_v23 = vld [vmem:[%s1251_s10 + $0xa0] sm:$0xff]  ;;  %568 = vperm.xlu0 %1035, %v554_v19  }
  0x1f   : > { %939 = vmatprep.subr.msk.bf16.mxu0 %vm1255_vm1, %v937_v13  ;;  %v303_v24 = vld [vmem:[%s1251_s10 + $0xa8] sm:$0xff]  ;;  %v946_v25 = vpack.c.bf16 %v285_v21, %v284_v20  ;;  %573 = vperm.xlu1 %1036, %v555_v22   ;;  %v286_v30 = vld [vmem:[%s1251_s10 + $0x20] sm:$0xff]  ;;  %v304_v33 = vld [vmem:[%s1251_s10 + $0xb0] sm:$0xff]  ;;  %p1078_p2 = por %p1077_p1, %p1076_p0 }
  0x20   : > { %942 = vmatpush3.bf16.xpose.msk.msra.mxu0 %vm1255_vm1, %v940_v17  ;;  %v949_v27 = vpack.c.bf16 %v303_v24, %v302_v23  ;;  %v287_v31 = vld [vmem:[%s1251_s10 + $0x28] sm:$0xff]  ;;  %v305_v34 = vld [vmem:[%s1251_s10 + $0xb8] sm:$0xff]  ;;  %v288_v38 = vld [vmem:[%s1251_s10 + $0x30] sm:$0xff] }
  0x21   : > { %945 = vmatprep.subr.msk.bf16.mxu0 %vm1255_vm1, %v943_v18  ;;  %v952_v35 = vpack.c.bf16 %v287_v31, %v286_v30  ;;  %v955_v37 = vpack.c.bf16 %v305_v34, %v304_v33  ;;  %v289_v39 = vld [vmem:[%s1251_s10 + $0x38] sm:$0xff]  ;;  %v306_v40 = vld [vmem:[%s1251_s10 + $0xc0] sm:$0xff]  ;;  %v307_v41 = vld [vmem:[%s1251_s10 + $0xc8] sm:$0xff]  ;;  %p1079_p3 = pnand %p1078_p2, %p1072_p13 }
  0x22   : > { %691 = vperm.xlu0 %1035, %v685_v26   ;;  %v958_v42 = vpack.c.bf16 %v289_v39, %v288_v38  ;;  %v961_v43 = vpack.c.bf16 %v307_v41, %v306_v40  ;;  %v290_v44 = vld [vmem:[%s1251_s10 + $0x40] sm:$0xff]  ;;  %v291_v45 = vld [vmem:[%s1251_s10 + $0x48] sm:$0xff]  ;;  %v308_v46 = vld [vmem:[%s1251_s10 + $0xd0] sm:$0xff] }
  0x23   : > { %696 = vperm.xlu1 %1036, %v686_v28   ;;  %v309_v47 = vld [vmem:[%s1251_s10 + $0xd8] sm:$0xff]  ;;  %v964_v48 = vpack.c.bf16 %v291_v45, %v290_v44  ;;  %v292_v50 = vld [vmem:[%s1251_s10 + $0x50] sm:$0xff]  ;;  %v310_v52 = vld [vmem:[%s1251_s10 + $0xe0] sm:$0xff] }
  0x24   : > { %v967_v49 = vpack.c.bf16 %v309_v47, %v308_v46  ;;  %v293_v51 = vld [vmem:[%s1251_s10 + $0x58] sm:$0xff]  ;;  %v311_v53 = vld [vmem:[%s1251_s10 + $0xe8] sm:$0xff]  ;;  %v294_v56 = vld [vmem:[%s1251_s10 + $0x60] sm:$0xff] }
  0x25   : > { %v970_v54 = vpack.c.bf16 %v293_v51, %v292_v50  ;;  %v973_v55 = vpack.c.bf16 %v311_v53, %v310_v52  ;;  %v295_v57 = vld [vmem:[%s1251_s10 + $0x68] sm:$0xff]  ;;  %v312_v58 = vld [vmem:[%s1251_s10 + $0xf0] sm:$0xff]  ;;  %v313_v59 = vld [vmem:[%s1251_s10 + $0xf8] sm:$0xff] }
  0x26   : > { %701 = vperm.xlu0 %1035, %v687_v29   ;;  %v976_v60 = vpack.c.bf16 %v295_v57, %v294_v56  ;;  %v979_v61 = vpack.c.bf16 %v313_v59, %v312_v58  ;;  %v296_v62 = vld [vmem:[%s1251_s10 + $0x70] sm:$0xff]  ;;  %v297_v63 = vld [vmem:[%s1251_s10 + $0x78] sm:$0xff]  ;;  %v549_v38 = vld [vmem:[%s1430_s3 + $0x8] sm:$0xff] }
  0x27   : > { %706 = vperm.xlu1 %1036, %v688_v32   ;;  %v982_v0 = vpack.c.bf16 %v297_v63, %v296_v62  ;;  %v550_v39 = vld [vmem:[%s1430_s3 + $0x10] sm:$0xff]  ;;  %v551_v40 = vld [vmem:[%s1430_s3 + $0x18] sm:$0xff] }
  0x28   : > { %948 = vmatpush3.bf16.xpose.msk.msra.mxu0 %vm1255_vm1, %v946_v25 }
  0x29   : > { %951 = vmatprep.subr.msk.bf16.mxu0 %vm1255_vm1, %v949_v27 }
  0x2a   : > { %738 = vperm.xlu0 %1035, %v735_v36  }
  0x30   : > { %954 = vmatpush3.bf16.xpose.msk.msra.mxu0 %vm1255_vm1, %v952_v35 }
  0x31   : > { %957 = vmatprep.subr.msk.bf16.mxu0 %vm1255_vm1, %v955_v37  ;;  %v548_v37 = vld [vmem:[%s1430_s3] sm:$0xff] }
  0x38   : > { %960 = vmatpush3.bf16.xpose.msk.msra.mxu0 %vm1255_vm1, %v958_v42 }
  0x39   : > { %963 = vmatprep.subr.msk.bf16.mxu0 %vm1255_vm1, %v961_v43 }
  0x40   : > { %966 = vmatpush3.bf16.xpose.msk.msra.mxu0 %vm1255_vm1, %v964_v48 }
  0x41   : > { %969 = vmatprep.subr.msk.bf16.mxu0 %vm1255_vm1, %v967_v49 }
  0x48   : > { %972 = vmatpush3.bf16.xpose.msk.msra.mxu0 %vm1255_vm1, %v970_v54 }
  0x49   : > { %975 = vmatprep.subr.msk.bf16.mxu0 %vm1255_vm1, %v973_v55 }
  0x50   : > { %978 = vmatpush3.bf16.xpose.msk.msra.mxu0 %vm1255_vm1, %v976_v60 }
  0x51   : > { %981 = vmatprep.subr.msk.bf16.mxu0 %vm1255_vm1, %v979_v61 }
  0x58   : > { %984 = vmatpush3.bf16.xpose.msk.msra.mxu0 %vm1255_vm1, %v982_v0 }
  0x5f   : > { %930 = vmatmul.mubr.msk.f32.vlgmr.msra.gmra.mrb[0].mxu0 %vm342_vm0, %v1230_v1  ;;  %v1134_v1 = vmov 0.0  }
  0x60   : > { %931 = vmatprep.mubr.msk.f32.mxu0 %vm342_vm0, %v315_v2  ;;  %652 = vmatprep.mubr.f32.mxu1 %v1134_v1 }
  0x63   : > { %932 = vmatmul.mubr.msk.f32.gmra.mrb[2].mxu0 %vm342_vm0, %v315_v2 }
  0x64   : > { %933 = vmatprep.mubr.msk.f32.mxu0 %vm342_vm0, %v316_v3 }
  0x67   : > { %934 = vmatmul.mubr.msk.f32.gmra.mrb[4].mxu0 %vm342_vm0, %v316_v3 }
  0x68   : > { %935 = vmatprep.mubr.msk.f32.mxu0 %vm342_vm0, %v317_v4 }
  0x6b   : > { %936 = vmatmul.mubr.msk.f32.gmra.mrb[6].mxu0 %vm342_vm0, %v317_v4 }
  0x91   : > { %v325_v5 = vpop.permute.xlu0 %324 }
  0x92   : > { %v335_v14 = vpop.permute.xlu1 %334 }
  0x95   : > { %v330_v10 = vpop.permute.xlu0 %329 }
  0x96   : > { %v340_v20 = vpop.permute.xlu1 %339 }
  0x99   : > { %v559_v41 = vpop.permute.xlu0 %558 }
  0x9a   : > { %v564_v46 = vpop.permute.xlu1 %563 }
  0x9d   : > { %v569_v51 = vpop.permute.xlu0 %568 }
  0x9e   : > { %v574_v56 = vpop.permute.xlu1 %573 }
  0xa1   : > { %v692_v62 = vpop.permute.xlu0 %691 }
  0xa2   : > { %v697_v2 = vpop.permute.xlu1 %696 }
 0x132   : > { %v517_v6 = vpop.f32.mrb[0].mxu0 }
 0x133   : > { %v518_v7 = vadd.f32 %v517_v6, %v325_v5  ;;  %v519_v8 = vpop.f32.mrb[1].mxu0 }
 0x134   : > { %v520_v9 = vadd.f32 %v519_v8, %v325_v5 }
 0x135   : > { %1037 = vtanh.f32 %v518_v7 }
 0x136   : > { %v523_v11 = vpop.f32.mrb[2].mxu0  ;;  %1039 = vtanh.f32 %v520_v9  ;;  %v702_v9 = vpop.permute.xlu0 %701 }
 0x137   : > { %v524_v12 = vadd.f32 %v523_v11, %v330_v10  ;;  %v525_v13 = vpop.f32.mrb[3].mxu0 }
 0x138   : > { %v526_v15 = vadd.f32 %v525_v13, %v330_v10 }
 0x139   : > { %1041 = vtanh.f32 %v524_v12 }
 0x13a   : > { %1043 = vtanh.f32 %v526_v15  ;;  %v529_v16 = vpop.f32.mrb[4].mxu0 }
 0x13b   : > { %v530_v17 = vadd.f32 %v529_v16, %v335_v14  ;;  %v531_v18 = vpop.f32.mrb[5].mxu0  ;;  %v707_v16 = vpop.permute.xlu1 %706 }
 0x13c   : > { %v532_v19 = vadd.f32 %v531_v18, %v335_v14 }
 0x13d   : > { %1045 = vtanh.f32 %v530_v17 }
 0x13e   : > { %v535_v21 = vpop.f32.mrb[6].mxu0  ;;  %1047 = vtanh.f32 %v532_v19 }
 0x13f   : > { %v536_v22 = vadd.f32 %v535_v21, %v340_v20  ;;  %v537_v23 = vpop.f32.mrb[7].mxu0  ;;  %v1038_v25 = vpop.eup %1037  ;;  %v741_v21 = vlaneseq }
 0x140   : > { %v538_v24 = vadd.f32 %v537_v23, %v340_v20  ;;  %v1040_v26 = vpop.eup %1039 }
 0x141   : > { %1049 = vtanh.f32 %v536_v22  ;;  %vm767_vm2 = vcmp.lt.s32.totalorder %v741_v21, 256 }
 0x142   : > { %1051 = vtanh.f32 %v538_v24 }
 0x143   : > { %v1042_v27 = vpop.eup %1041 }
 0x144   : > { %v1044_v28 = vpop.eup %1043  ;;  %v987_v29 = vpack.c.bf16 %v1042_v27, %v1038_v25 }
 0x145   : > { %v985_v30 = vpack.c.bf16 %v1044_v28, %v1040_v26  ;;  %v742_v26 = vshrl.u32 %v741_v21, 7 }
 0x147   : > { %986 = vmatprep.subr.bf16.mxu1 %v985_v30  ;;  %v1046_v31 = vpop.eup %1045  ;;  %v1135_v30 = vmov 1966171168  }
 0x148   : > { %988 = vmatpush1.bf16.msra.mxu1 %v987_v29  ;;  %v1048_v32 = vpop.eup %1047 }
 0x14b   : > { %v1050_v33 = vpop.eup %1049 }
 0x14c   : > { %v1052_v34 = vpop.eup %1051  ;;  %v991_v35 = vpack.c.bf16 %v1050_v33, %v1046_v31  ;;  %v751_v31 = vunpack.c.l.s4 %v1135_v30  ;;  %v743_v33 = vsub.s32 0, %v742_v26 }
 0x14d   : > { %v989_v36 = vpack.c.bf16 %v1052_v34, %v1048_v32 }
 0x14f   : > { %990 = vmatprep.subr.bf16.mxu1 %v989_v36 }
 0x150   : > { %992 = vmatpush1.bf16.msra.mxu1 %v991_v35  ;;  %v739_v35 = vpop.permute.xlu0 %738 }
 0x153   : > { %887 = vmatmul.mubr.msk.f32.vlgmr.msra.gmra.mrb[0].mxu1 %vm342_vm0, %v548_v37 }
 0x154   : > { %658 = vmatprep.mubr.f32.mxu1 %v1134_v1 }
 0x157   : > { %888 = vmatmul.mubr.msk.f32.gmra.mrb[2].mxu1 %vm342_vm0, %v549_v38  ;;  %v752_v38 = vunpack.c.0.s8 %v751_v31 }
 0x158   : > { %664 = vmatprep.mubr.f32.mxu1 %v1134_v1 }
 0x15b   : > { %889 = vmatmul.mubr.msk.f32.gmra.mrb[4].mxu1 %vm342_vm0, %v550_v39 }
 0x15c   : > { %670 = vmatprep.mubr.f32.mxu1 %v1134_v1 }
 0x15f   : > { %890 = vmatmul.mubr.msk.f32.gmra.mrb[6].mxu1 %vm342_vm0, %v551_v40  ;;  %v744_v40 = vrot.slane %v739_v35, %v743_v33 }
 0x226   : > { %v654_v42 = vpop.f32.mrb[0].mxu1 }
 0x227   : > { %v655_v43 = vadd.f32 %v654_v42, %v559_v41  ;;  %v656_v44 = vpop.f32.mrb[1].mxu1 }
 0x228   : > { %v657_v45 = vadd.f32 %v656_v44, %v559_v41  ;;  %v755_v44 = vsub.s32 %v752_v38, %v742_v26 }
 0x229   : > { %1053 = vtanh.f32 %v655_v43 }
 0x22a   : > { %v660_v47 = vpop.f32.mrb[2].mxu1  ;;  %1055 = vtanh.f32 %v657_v45 }
 0x22b   : > { %v661_v48 = vadd.f32 %v660_v47, %v564_v46  ;;  %v662_v49 = vpop.f32.mrb[3].mxu1 }
 0x22c   : > { %v663_v50 = vadd.f32 %v662_v49, %v564_v46 }
 0x22d   : > { %1057 = vtanh.f32 %v661_v48 }
 0x22e   : > { %1059 = vtanh.f32 %v663_v50  ;;  %v666_v52 = vpop.f32.mrb[4].mxu1 }
 0x22f   : > { %v667_v53 = vadd.f32 %v666_v52, %v569_v51  ;;  %v668_v54 = vpop.f32.mrb[5].mxu1 }
 0x230   : > { %v669_v55 = vadd.f32 %v668_v54, %v569_v51 }
 0x231   : > { %1061 = vtanh.f32 %v667_v53 }
 0x232   : > { %1063 = vtanh.f32 %v669_v55  ;;  %v672_v57 = vpop.f32.mrb[6].mxu1 }
 0x233   : > { %v673_v58 = vadd.f32 %v672_v57, %v574_v56  ;;  %v674_v59 = vpop.f32.mrb[7].mxu1  ;;  %v1054_v61 = vpop.eup %1053 }
 0x234   : > { %v675_v60 = vadd.f32 %v674_v59, %v574_v56  ;;  %v1056_v63 = vpop.eup %1055  ;;  %v709_v4 = vmul.f32 %v1054_v61, %v692_v62 }
 0x235   : > { %1065 = vtanh.f32 %v673_v58  ;;  %v710_v5 = vmul.f32 %v1056_v63, %v692_v62 }
 0x236   : > { %1067 = vtanh.f32 %v675_v60 }
 0x237   : > { %v1058_v0 = vpop.eup %1057 }
 0x238   : > { %v1060_v3 = vpop.eup %1059  ;;  %v711_v1 = vmul.f32 %v1058_v0, %v697_v2 }
 0x239   : > { %v712_v6 = vmul.f32 %v1060_v3, %v697_v2 }
 0x23a   : > { %v717_v7 = vadd.f32 %v711_v1, %v709_v4 }
 0x23b   : > { %v1062_v8 = vpop.eup %1061  ;;  %v726_v10 = vadd.f32 %v712_v6, %v710_v5 }
 0x23c   : > { %v1064_v11 = vpop.eup %1063  ;;  %v713_v12 = vmul.f32 %v1062_v8, %v702_v9 }
 0x23d   : > { %v714_v13 = vmul.f32 %v1064_v11, %v702_v9 }
 0x23e   : > { %v718_v14 = vadd.f32 %v717_v7, %v713_v12 }
 0x23f   : > { %v1066_v15 = vpop.eup %1065  ;;  %v727_v17 = vadd.f32 %v726_v10, %v714_v13 }
 0x240   : > { %v1068_v18 = vpop.eup %1067  ;;  %v715_v19 = vmul.f32 %v1066_v15, %v707_v16 }
 0x241   : > { %v716_v20 = vmul.f32 %v1068_v18, %v707_v16 }
 0x242   : > { %v719_v22 = vadd.f32 %v718_v14, %v715_v19 }
 0x243   : > { %v728_v23 = vadd.f32 %v727_v17, %v716_v20 }
 0x244   : > { %v720_v24 = vrot.slane %v719_v22, 4 }
 0x245   : > { %v729_v25 = vrot.slane %v728_v23, 4 }
 0x246   : > { %v721_v27 = vadd.f32 %v720_v24, %v719_v22 }
 0x247   : > { %v730_v28 = vadd.f32 %v729_v25, %v728_v23 }
 0x248   : > { %v722_v29 = vrot.slane %v721_v27, 2 }
 0x249   : > { %v731_v32 = vrot.slane %v730_v28, 2 }
 0x24a   : > { %v723_v34 = vadd.f32 %v722_v29, %v721_v27 }
 0x24b   : > { %v732_v36 = vadd.f32 %v731_v32, %v730_v28 }
 0x24c   : > { %v724_v37 = vrot.slane %v723_v34, 1 }
 0x24d   : > { %v733_v39 = vrot.slane %v732_v36, 1 }
 0x24e   : > { %v725_v41 = vadd.f32 %v724_v37, %v723_v34 }
 0x24f   : > { %v734_v42 = vadd.f32 %v733_v39, %v732_v36 }
 0x250   : > { %v745_v43 = vadd.f32 %v744_v40, %v725_v41 }
 0x251   : > { %v746_v45 = vadd.f32 %v744_v40, %v734_v42 }
 0x253   : > { %v749_v46 = vcombine.low %v745_v43, %v746_v45 }
 0x255   : > { %v756_v47 = vrot.slane %v749_v46, %v755_v44 }
 0x257   : > { %v763_v48 = vrot.slane %v756_v47, %v755_v44 }
 0x259   : > { %769 = vst.msk [vmem:[%s274_s18] sm:$0x3] %vm767_vm2, %v763_v48 }
 0x25a   : > { %1082 = shalt.err (!%p1079_p3)
}
 0x25b   : > { %s1083_s14 = scalar_lea.hbm %s1385_s21, 32  ;;  %s1087_s15 = scalar_lea.hbm %s1434_s7, 64 }
 0x25c   : > { %p1084_p4 = scmp.ne.s32.totalorder %s1385_s21, %s1083_s14  ;;  %p1088_p9 = scmp.lt.u32.totalorder %s1385_s21, %s1434_s7 }
 0x25d   : > { %p1089_p10 = scmp.lt.u32.totalorder %s1087_s15, %s1083_s14  ;;  %p1091_p12 = scmp.lt.u32.totalorder %s1083_s14, %s1385_s21 }
 0x25e   : > { %p1085_p7 = pnand %p1084_p4, %p1215_p5 }
 0x25f   : > { %p1090_p11 = por %p1089_p10, %p1088_p9 }
 0x260   : > { %p1086_p8 = pneg %p1085_p7 }
 0x261   : > { %p1092_p13 = por %p1091_p12, %p1090_p11 }
 0x263   : > { %p1093_p0 = pnand %p1092_p13, %p1086_p8 }
 0x265   : > { %1096 = shalt.err (!%p1093_p0)
}
 0x266   : > { %993 = dma.vmem_to_hbm [thread:$0]  (%p1215_p5), %s1387_s19, 32, %s1385_s21, %s771_s22  }
 0x267 PF: > { %p999_p1 = scmp.ge.s32.totalorder %s1131_s29, 2  ;;  %s797_s18 = sand.u32 1, %s1119_s26  }
 0x268   : > { %s798_s20 = scalar_lea.sflag [#allocation4], %s797_s18 }
 0x269   : > { %p996_p2 = pnand %p999_p1, %p1219_p6 }
 0x26b   : > { %1114 = dma.done.wait (!%p996_p2), %s798_s20, 32  }
 0x26c   : > { %1116 = vsyncadd (!%p996_p2), %s798_s20, 4294967264  ;;  %p19_p3 = scmp.ge.s32.totalorder %s1203_s8, 4   ;;  %s1439_s26 = smov %s1123_s27 }
 0x26d   : > { %s1440_s27 = smov %s1127_s28  ;;  %s1441_s28 = smov %s1213_s11 }
 0x26e   : > { %s1442_s29 = smov %s1203_s8  ;;  %21 = sbr.rel (!%p19_p3) target bundleno = 6 (0x6), region = 83 }
 0x275   :  { %803 = vsyncpa [#allocation4], 1 }
 0x276   :  { %805 = vsyncpa [#allocation4 + $0x1], 1 }

</bundles_post_ra>
